<compile_context>
chip_gen: v7x
topology: tpu7x:2x2x1
jax: 0.10.0
libtpu: 0.0.40
codegen_flags: <defaults>
</compile_context>

<pallas_src>
import jax
import jax.numpy as jnp
from jax.experimental import pallas as pl
from jax.experimental.pallas import tpu as pltpu

_LANES = 128


def _default_num_splits():
    """One split per TensorCore: 2 on v7x, 1 on single-TC chips (v5e/v6e/...)."""
    try:
        kind = jax.devices()[0].device_kind.lower()
        if "v7" in kind:
            return 2
    except Exception:
        pass
    return 1


def discriminator_loss(d_out_generated, d_out_cartoon, d_out_smoothed,
                       *, num_splits=None, max_tile_rows=1024):
    """All inputs: [B, 1, H, W] discriminator sigmoid outputs (any float dtype)."""
    assert d_out_generated.shape == d_out_cartoon.shape == d_out_smoothed.shape
    assert max_tile_rows % 16 == 0  # (8,128) f32 tile and (16,128) bf16 tile friendly
    n = d_out_generated.size  # true element count (mean denominator)

    # ---- Lane-dense layout: (rows, 128). Free reshape when n % 128 == 0. ----
    if n % _LANES == 0:
        rows = n // _LANES

        def prep(x, _neutral):
            return x.reshape(rows, _LANES)
    else:
        # Rare fallback: pad only the lane tail with this term's BCE-neutral value
        # (contributes exactly 0), keeping the native dtype.
        rows = pl.cdiv(n, _LANES)
        padded_n = rows * _LANES

        def prep(x, neutral):
            flat = x.reshape(-1)
            flat = jnp.pad(flat, (0, padded_n - n), constant_values=neutral)
            return flat.reshape(rows, _LANES)

    g2d = prep(d_out_generated, 0.0)   # target 0: -log(1 - 0) = 0
    c2d = prep(d_out_cartoon, 1.0)     # target 1: -log(1)     = 0
    s2d = prep(d_out_smoothed, 0.0)    # target 0

    # ---- Tiling / split selection. ----
    if num_splits is None:
        num_splits = _default_num_splits()

    if rows <= max_tile_rows:
        # Small-input fast path: one full-array block, grid (1, 1).
        num_splits = 1
        tile_rows = rows                    # block == full array dims -> legal
        num_blocks = 1
    else:
        tile_rows = max_tile_rows           # multiple of (8,128)/(16,128) tiles
        num_blocks = pl.cdiv(rows, tile_rows)
        num_splits = max(1, min(num_splits, num_blocks))

    tiles_per_split = pl.cdiv(num_blocks, num_splits)
    grid_rows = num_splits * tiles_per_split * tile_rows
    needs_mask = grid_rows > rows                           # block overhang exists
    needs_clamp = num_splits * tiles_per_split > num_blocks  # fully-OOB grid steps
    last_block = num_blocks - 1

    def in_index(p, t):
        b = p * tiles_per_split + t
        if needs_clamp:
            # Re-fetch the last real block for out-of-range steps; their
            # contribution is zeroed by the nominal-row mask in the kernel.
            b = jnp.minimum(b, last_block)
        return (b, 0)

    def kernel(gen_ref, cartoon_ref, smoothed_ref, out_ref):
        p = pl.program_id(0)
        t = pl.program_id(1)

        @pl.when(t == 0)
        def _():
            out_ref[...] = jnp.zeros_like(out_ref)

        g = gen_ref[...].astype(jnp.float32)
        c = cartoon_ref[...].astype(jnp.float32)
        s = smoothed_ref[...].astype(jnp.float32)

        # Merge the three clamped-log terms elementwise (VALU/EUP); negate and
        # 1/N are folded into the final wrapper scalar.
        term = (jnp.maximum(jnp.log(1.0 - g), -100.0)    # BCE(g, 0) term
                + jnp.maximum(jnp.log(c), -100.0)        # BCE(c, 1) term
                + jnp.maximum(jnp.log(1.0 - s), -100.0))  # BCE(s, 0) term

        if needs_mask:
            # Zero rows beyond the real data (tile overhang / split rounding),
            # using the NOMINAL block position so duplicated clamped fetches
            # never double-count.
            row_base = (p * tiles_per_split + t) * tile_rows
            local_row = jax.lax.broadcasted_iota(jnp.int32, term.shape, 0)
            term = jnp.where(row_base + local_row < rows, term, 0.0)

        # Per-tile sublane reduce (XLU) straight into the resident output block.
        out_ref[...] += jnp.sum(term, axis=0, keepdims=True)

    in_spec = pl.BlockSpec((tile_rows, _LANES), in_index)

    # 3 inputs x 2 pipeline buffers + resident output + slack.
    in_itemsize = jnp.dtype(d_out_generated.dtype).itemsize
    tile_bytes = tile_rows * _LANES * in_itemsize
    vmem_limit = int(min(32 * 2**20, max(4 * 2**20, 8 * tile_bytes + 2 * 2**20)))

    partials = pl.pallas_call(
        kernel,
        out_shape=jax.ShapeDtypeStruct((num_splits, _LANES), jnp.float32),
        grid_spec=pltpu.PrefetchScalarGridSpec(
            num_scalar_prefetch=0,
            grid=(num_splits, tiles_per_split),
            in_specs=[in_spec, in_spec, in_spec],
            out_specs=pl.BlockSpec((1, _LANES), lambda p, t: (p, 0)),
        ),
        compiler_params=pltpu.CompilerParams(
            dimension_semantics=("parallel", "arbitrary"),
            vmem_limit_bytes=vmem_limit),
    )(g2d, c2d, s2d)

    # Tiny final reduction + negate + mean (num_splits x 128 elements).
    return -jnp.sum(partials) / jnp.float32(n)


def _reference_loss(g, c, s):
    clamp_log = lambda x: jnp.maximum(jnp.log(x), -100.0)
    bce0 = lambda x: jnp.mean(-clamp_log(1.0 - x.astype(jnp.float32)))
    bce1 = lambda x: jnp.mean(-clamp_log(x.astype(jnp.float32)))
    return bce0(g) + bce1(c) + bce0(s)


if __name__ == "__main__":
    # Small shapes consistent with the module: image_size=64 -> D outputs
    # of shape [B, 1, 16, 16].
    batch = 2
    image_size = 64
    hw = image_size // 4

    key = jax.random.PRNGKey(0)
    k1, k2, k3 = jax.random.split(key, 3)
    # Discriminator outputs are sigmoid activations in (0, 1).
    d_gen = jax.nn.sigmoid(jax.random.normal(k1, (batch, 1, hw, hw), jnp.float32))
    d_cartoon = jax.nn.sigmoid(jax.random.normal(k2, (batch, 1, hw, hw), jnp.float32))
    d_smoothed = jax.nn.sigmoid(jax.random.normal(k3, (batch, 1, hw, hw), jnp.float32))

    loss = discriminator_loss(d_gen, d_cartoon, d_smoothed)
    loss = jax.block_until_ready(loss)

    ref = _reference_loss(d_gen, d_cartoon, d_smoothed)
    assert jnp.allclose(loss, ref, rtol=1e-5, atol=1e-5), (loss, ref)

    # Also exercise a larger, multi-tile, non-divisible row count to cover the
    # masked general path (rows > max_tile_rows with overhang).
    big_shape = (4, 1, 64, 64)  # 16384 elems -> 128 rows
    kb1, kb2, kb3 = jax.random.split(jax.random.PRNGKey(1), 3)
    bg = jax.nn.sigmoid(jax.random.normal(kb1, big_shape, jnp.float32))
    bc = jax.nn.sigmoid(jax.random.normal(kb2, big_shape, jnp.float32))
    bs = jax.nn.sigmoid(jax.random.normal(kb3, big_shape, jnp.float32))
    big = jax.block_until_ready(
        discriminator_loss(bg, bc, bs, max_tile_rows=48, num_splits=2))
    big_ref = _reference_loss(bg, bc, bs)
    assert jnp.allclose(big, big_ref, rtol=1e-5, atol=1e-5), (big, big_ref)

    print("KERNEL_OK")
</pallas_src>

<mosaic_0001>
module attributes {stable_mosaic.version = 11 : i64} {
  func.func @kernel(%arg0: i32, %arg1: i32, %arg2: memref<4x128xf32, #tpu.memory_space<vmem>>, %arg3: memref<4x128xf32, #tpu.memory_space<vmem>>, %arg4: memref<4x128xf32, #tpu.memory_space<vmem>>, %arg5: memref<1x128xf32, #tpu.memory_space<vmem>>) attributes {dimension_semantics = [#tpu.dimension_semantics<parallel>, #tpu.dimension_semantics<arbitrary>], iteration_bounds = array<i64: 1, 1>, scalar_prefetch = 0 : i64, scratch_operands = 0 : i64, tpu.core_type = #tpu.core_type<tc>, window_params = [{transform_indices = @transform_0, window_bounds = array<i64: 4, 128>}, {transform_indices = @transform_1, window_bounds = array<i64: 4, 128>}, {transform_indices = @transform_2, window_bounds = array<i64: 4, 128>}, {transform_indices = @transform_3, window_bounds = array<i64: 1, 128>}]} {
    %c0_i32 = arith.constant 0 : i32
    %0 = arith.cmpi eq, %arg1, %c0_i32 : i32
    %1 = arith.extui %0 : i1 to i32
    %c0_i32_0 = arith.constant 0 : i32
    %2 = arith.cmpi ne, %1, %c0_i32_0 : i32
    scf.if %2 {
      %cst_15 = arith.constant 0.000000e+00 : f32
      %26 = vector.broadcast %cst_15 : f32 to vector<1x128xf32>
      %c0_16 = arith.constant 0 : index
      %c0_17 = arith.constant 0 : index
      %27 = vector.load %arg5[%c0_16, %c0_17] : memref<1x128xf32, #tpu.memory_space<vmem>>, vector<1x128xf32>
      tpu.vector_store %arg5[%c0_16, %c0_17], %26 {strides = array<i32>} : memref<1x128xf32, #tpu.memory_space<vmem>>, vector<1x128xf32>,
    } else {
    }
    %c0 = arith.constant 0 : index
    %c0_1 = arith.constant 0 : index
    %3 = vector.load %arg2[%c0, %c0_1] : memref<4x128xf32, #tpu.memory_space<vmem>>, vector<4x128xf32>
    %c0_2 = arith.constant 0 : index
    %c0_3 = arith.constant 0 : index
    %4 = vector.load %arg3[%c0_2, %c0_3] : memref<4x128xf32, #tpu.memory_space<vmem>>, vector<4x128xf32>
    %c0_4 = arith.constant 0 : index
    %c0_5 = arith.constant 0 : index
    %5 = vector.load %arg4[%c0_4, %c0_5] : memref<4x128xf32, #tpu.memory_space<vmem>>, vector<4x128xf32>
    %cst = arith.constant 1.000000e+00 : f32
    %6 = vector.broadcast %cst : f32 to vector<4x128xf32>
    %7 = arith.subf %6, %3 : vector<4x128xf32>
    %8 = math.log %7 : vector<4x128xf32>
    %cst_6 = arith.constant -1.000000e+02 : f32
    %9 = vector.broadcast %cst_6 : f32 to vector<4x128xf32>
    %10 = arith.maximumf %8, %9 : vector<4x128xf32>
    %11 = math.log %4 : vector<4x128xf32>
    %cst_7 = arith.constant -1.000000e+02 : f32
    %12 = vector.broadcast %cst_7 : f32 to vector<4x128xf32>
    %13 = arith.maximumf %11, %12 : vector<4x128xf32>
    %14 = arith.addf %10, %13 : vector<4x128xf32>
    %cst_8 = arith.constant 1.000000e+00 : f32
    %15 = vector.broadcast %cst_8 : f32 to vector<4x128xf32>
    %16 = arith.subf %15, %5 : vector<4x128xf32>
    %17 = math.log %16 : vector<4x128xf32>
    %cst_9 = arith.constant -1.000000e+02 : f32
    %18 = vector.broadcast %cst_9 : f32 to vector<4x128xf32>
    %19 = arith.maximumf %17, %18 : vector<4x128xf32>
    %20 = arith.addf %14, %19 : vector<4x128xf32>
    %c0_10 = arith.constant 0 : index
    %c0_11 = arith.constant 0 : index
    %21 = vector.load %arg5[%c0_10, %c0_11] : memref<1x128xf32, #tpu.memory_space<vmem>>, vector<1x128xf32>
    %cst_12 = arith.constant dense<0.000000e+00> : vector<128xf32>
    %22 = vector.multi_reduction <add>, %20, %cst_12 [0] : vector<4x128xf32> to vector<128xf32>
    %23 = vector.shape_cast %22 : vector<128xf32> to vector<1x128xf32>
    %24 = arith.addf %21, %23 : vector<1x128xf32>
    %c0_13 = arith.constant 0 : index
    %c0_14 = arith.constant 0 : index
    %25 = vector.load %arg5[%c0_13, %c0_14] : memref<1x128xf32, #tpu.memory_space<vmem>>, vector<1x128xf32>
    tpu.vector_store %arg5[%c0_13, %c0_14], %24 {strides = array<i32>} : memref<1x128xf32, #tpu.memory_space<vmem>>, vector<1x128xf32>,
    return
  }
  func.func @transform_0(%arg0: i32, %arg1: i32) -> (i32, i32) {
    %c1_i32 = arith.constant 1 : i32
    %0 = arith.muli %arg0, %c1_i32 : i32
    %1 = arith.addi %0, %arg1 : i32
    %c0_i32 = arith.constant 0 : i32
    %c0_i32_0 = arith.constant 0 : i32
    return %1, %c0_i32 : i32, i32
  }
  func.func @transform_1(%arg0: i32, %arg1: i32) -> (i32, i32) {
    %c1_i32 = arith.constant 1 : i32
    %0 = arith.muli %arg0, %c1_i32 : i32
    %1 = arith.addi %0, %arg1 : i32
    %c0_i32 = arith.constant 0 : i32
    %c0_i32_0 = arith.constant 0 : i32
    return %1, %c0_i32 : i32, i32
  }
  func.func @transform_2(%arg0: i32, %arg1: i32) -> (i32, i32) {
    %c1_i32 = arith.constant 1 : i32
    %0 = arith.muli %arg0, %c1_i32 : i32
    %1 = arith.addi %0, %arg1 : i32
    %c0_i32 = arith.constant 0 : i32
    %c0_i32_0 = arith.constant 0 : i32
    return %1, %c0_i32 : i32, i32
  }
  func.func @transform_3(%arg0: i32, %arg1: i32) -> (i32, i32) {
    %c0_i32 = arith.constant 0 : i32
    %c0_i32_0 = arith.constant 0 : i32
    return %arg0, %c0_i32 : i32, i32
  }
}

</mosaic_0001>

<bundles_post_ra>
// kernel: tpu_custom_call.1
= control target key start
LH: loop header
LB: loop body
LE: loop exit
PB: predicated region body
PF: predicated region fallthrough
CT: control target
= control target key end

     0   :  { %8 = vsyncpa [#allocation3], 0  ;;  %s263_s0 = inlined_call_operand.hbm [shape: f32[4,128], index: 0, kind: input, shape index: {}]   ;;  %s264_s1 = inlined_call_operand.hbm [shape: f32[4,128], index: 1, kind: input, shape index: {}]   ;;  %s265_s2 = inlined_call_operand.vmem [shape: f32[4,128], index: 2, kind: input, shape index: {}]   ;;  %s266_s3 = inlined_call_operand.hbm [shape: f32[1,128], index: 3, kind: output, shape index: {}]  }
   0x1   :  { %9 = vsyncpa [#allocation6], 0 }
   0x2   :  { %10 = vsyncpa [#allocation4], 0  ;;  %s200_s12 = smov [#allocation2]   ;;  %s201_s14 = smov [#allocation5]  }
   0x3   :  { %s20_s13 = sshll.u32 %s200_s12, 4  ;;  %s33_s15 = sshll.u32 %s201_s14, 4  ;;  %s21_s13 = int_to_ptr.vmem [resolvable:$true] %s20_s13  ;;  %s34_s15 = int_to_ptr.vmem [resolvable:$true] %s33_s15 }
   0x4   :  { %s128_s18 = scalar_lea.hbm %s263_s0, 64 }
   0x5   :  { %p129_p0 = scmp.ne.s32.totalorder %s263_s0, %s128_s18  ;;  %p132_p1 = scmp.lt.u32.totalorder %s128_s18, %s263_s0 }
   0x7   :  { %p134_p2 = pnand %p132_p1, %p129_p0 }
   0x9   :  { %137 = shalt.err (!%p134_p2)
}
   0xa   :  { %s138_s23 = scalar_lea.vmem %s21_s13, 64  ;;  %p143_p4 = scmp.lt.s32.totalorder %s21_s13, %s21_s13 }
   0xb   :  { %p139_p3 = scmp.ne.s32.totalorder %s21_s13, %s138_s23  ;;  %p144_p5 = scmp.lt.s32.totalorder %s138_s23, %s138_s23 }
   0xd   :  { %p145_p6 = por %p144_p5, %p143_p4 }
   0xf   :  { %p146_p7 = pnand %p145_p6, %p139_p3 }
  0x11   :  { %149 = shalt.err (!%p146_p7)
}
  0x12   :  { %23 = dma.hbm_to_vmem [thread:$0]  %s263_s0, 64, %s21_s13, [#allocation3]  }
  0x13   :  { %s150_s28 = scalar_lea.hbm %s264_s1, 64 }
  0x14   :  { %p151_p8 = scmp.ne.s32.totalorder %s264_s1, %s150_s28  ;;  %p154_p9 = scmp.lt.u32.totalorder %s150_s28, %s264_s1 }
  0x16   :  { %p156_p10 = pnand %p154_p9, %p151_p8 }
  0x18   :  { %159 = shalt.err (!%p156_p10)
}
  0x19   :  { %s160_s6 = scalar_lea.vmem %s34_s15, 64  ;;  %p165_p12 = scmp.lt.s32.totalorder %s34_s15, %s34_s15 }
  0x1a   :  { %p161_p11 = scmp.ne.s32.totalorder %s34_s15, %s160_s6  ;;  %p166_p13 = scmp.lt.s32.totalorder %s160_s6, %s160_s6 }
  0x1c   :  { %p167_p0 = por %p166_p13, %p165_p12 }
  0x1e   :  { %p168_p1 = pnand %p167_p0, %p161_p11 }
  0x20   :  { %171 = shalt.err (!%p168_p1)
}
  0x21   :  { %36 = dma.hbm_to_vmem [thread:$0]  %s264_s1, 64, %s34_s15, [#allocation6]  }
  0x22   :  { %194 = dma.done.wait [#allocation3], 64  }
  0x23   :  { %195 = vsyncadd [#allocation3], 4294967232 }
  0x24   :  { %196 = dma.done.wait [#allocation6], 64  }
  0x25   :  { %197 = vsyncadd [#allocation6], 4294967232  ;;  %v202_v0 = vmov 0.0   ;;  %v69_v1 = vld [vmem:[#allocation2] sm:$0xf]  ;;  %vm86_vm0 = vcmask 1043456  }
  0x26   :  { %68 = vst [vmem:[#allocation7] sm:$0x1] %v202_v0  ;;  %v70_v2 = vld [vmem:[#allocation5] sm:$0xf]  ;;  %v71_v3 = vld [vmem:[%s265_s2] sm:$0xf] }
  0x27   :  { %v72_v4 = vsub.f32 1.0, %v69_v1  ;;  %122 = vlog2.f32 %v70_v2  ;;  %v80_v5 = vsub.f32 1.0, %v71_v3  ;;  %s203_s1 = smov [#allocation7]  }
  0x28   :  { %s102_s2 = sshll.u32 %s203_s1, 4  ;;  %s103_s2 = int_to_ptr.vmem [resolvable:$true] %s102_s2 }
  0x29   :  { %124 = vlog2.f32 %v72_v4  ;;  %s172_s10 = scalar_lea.vmem %s103_s2, 16  ;;  %s176_s11 = scalar_lea.vmem %s103_s2, 32 }
  0x2a   :  { %126 = vlog2.f32 %v80_v5  ;;  %p173_p2 = scmp.ne.s32.totalorder %s103_s2, %s172_s10  ;;  %p177_p3 = scmp.lt.s32.totalorder %s103_s2, %s103_s2 }
  0x2b   :  { %p178_p4 = scmp.lt.s32.totalorder %s176_s11, %s172_s10 }
  0x2d   :  { %v85_v23 = vld [vmem:[#allocation7] sm:$0x1]  ;;  %p179_p5 = por %p178_p4, %p177_p3 }
  0x2f   :  { %p180_p6 = pnand %p179_p5, %p173_p2 }
  0x31   :  { %v123_v6 = vpop.eup %122 }
  0x32   :  { %v77_v7 = vmul.f32 0.6931472, %v123_v6 }
  0x33   :  { %v125_v8 = vpop.eup %124 }
  0x34   :  { %v127_v9 = vpop.eup %126  ;;  %v74_v10 = vmul.f32 0.6931472, %v125_v8  ;;  %v78_v11 = vmax.f32 %v77_v7, -100.0 }
  0x35   :  { %v82_v12 = vmul.f32 0.6931472, %v127_v9 }
  0x36   :  { %v75_v13 = vmax.f32 %v74_v10, -100.0 }
  0x37   :  { %v83_v14 = vmax.f32 %v82_v12, -100.0 }
  0x38   :  { %v79_v15 = vadd.f32 %v78_v11, %v75_v13 }
  0x3a   :  { %v84_v16 = vadd.f32 %v83_v14, %v79_v15 }
  0x3c   :  { %v87_v17 = vsel %vm86_vm0, %v84_v16, 0.0 }
  0x3d   :  { %v88_v18 = vrot.slane %v87_v17, 4 }
  0x3f   :  { %v89_v19 = vadd.f32 %v88_v18, %v87_v17 }
  0x41   :  { %v90_v20 = vrot.slane %v89_v19, 2 }
  0x43   :  { %v91_v21 = vadd.f32 %v90_v20, %v89_v19 }
  0x45   :  { %v92_v22 = vrot.slane %v91_v21, 1 }
  0x47   :  { %v93_v24 = vadd.f32 %v92_v22, %v91_v21 }
  0x49   :  { %v94_v25 = vadd.f32 %v93_v24, %v85_v23 }
  0x4b   :  { %95 = vst [vmem:[#allocation7] sm:$0x1] %v94_v25 }
  0x4c   :  { %183 = shalt.err (!%p180_p6)
}
  0x4d   :  { %s184_s14 = scalar_lea.hbm %s266_s3, 16 }
  0x4e   :  { %p185_p7 = scmp.ne.s32.totalorder %s266_s3, %s184_s14  ;;  %p188_p8 = scmp.lt.u32.totalorder %s184_s14, %s266_s3 }
  0x50   :  { %p190_p9 = pnand %p188_p8, %p185_p7 }
  0x52   :  { %193 = shalt.err (!%p190_p9)
}
  0x53   :  { %105 = dma.vmem_to_hbm [thread:$0]  %s103_s2, 16, %s266_s3, [#allocation4]  }
  0x54   :  { %198 = dma.done.wait [#allocation4], 16  }
  0x55   :  { %199 = vsyncadd [#allocation4], 4294967280 }
  0x56   :  { %109 = vsyncpa [#allocation3], 1 }
  0x57   :  { %110 = vsyncpa [#allocation6], 1 }
  0x58   :  { %111 = vsyncpa [#allocation4], 1 }

</bundles_post_ra>
